<compile_context>
chip_gen: v5e
topology: v5e:2x2
jax: 0.10.0
libtpu: 0.0.40
codegen_flags: <defaults>
</compile_context>

<pallas_src>
import jax
import jax.numpy as jnp
import numpy as np
from jax.experimental import pallas as pl
from jax.experimental.pallas import tpu as pltpu


def gcn_kernel(nodes_ref, adjcs_ref, embwt_ref, cw_ref, embcw_ref, cb_ref, out_ref):
    # Block shapes: nodes (1,1,R) i32, adjcs (1,1,R) f32, embwt (H,na),
    # cw (1,H), embcw SMEM (1,na), cb SMEM (1,1), out (1,1,TB).
    R = nodes_ref.shape[2]
    H, na = embwt_ref.shape
    TB = out_ref.shape[2]
    N = R // TB

    ids = nodes_ref[0]                                                # (1, R) i32, nodes on lanes
    adjcs = adjcs_ref[0]                                              # (1, R) f32

    # One-hot (transposed) + folded embedding/W transform for all R nodes of
    # this step in a single MXU call: whT[h, r] = (emb @ W.T)[id_r, h].
    ohT = (jax.lax.broadcasted_iota(jnp.int32, (na, R), 0) == ids
           ).astype(jnp.float32)                                      # (na, R)
    whT = jnp.dot(embwt_ref[...], ohT,
                  preferred_element_type=jnp.float32)                 # (H, R)
    awhT = jax.nn.sigmoid(whT)

    # Per-node count score p_r = cw . awh_r  (one (1,H)@(H,R) dot).
    p = jnp.dot(cw_ref[...], awhT, preferred_element_type=jnp.float32)  # (1, R)

    # Per-node h-colsum contribution q_r = (emb @ cw.T)[id_r]; na is tiny so a
    # short select chain over SMEM scalars is cheaper than another matmul.
    q = jnp.zeros((1, R), jnp.float32)
    for a in range(na):
        q = q + jnp.where(ids == a, embcw_ref[0, a], 0.0)

    z = adjcs * p + q                                                 # (1, R)

    # Per-graph sums of N consecutive nodes via one (1,R)@(R,TB) dot against a
    # block-diagonal 0/1 matrix; the result lands lane-dense as (1, TB).
    r_idx = jax.lax.broadcasted_iota(jnp.int32, (R, TB), 0)
    g_idx = jax.lax.broadcasted_iota(jnp.int32, (R, TB), 1)
    d = r_idx - g_idx * N
    grp = ((d >= 0) & (d < N)).astype(jnp.float32)                    # (R, TB)
    totals = jnp.dot(z, grp, preferred_element_type=jnp.float32)      # (1, TB)

    out_ref[0] = totals + N * cb_ref[0, 0]


def gcn_forward(nodes, adj, emb, W, cw, cb, *, target_rows=1024):
    """nodes: (B, N) int, adj: (B, N, N) float. Returns (B,) f32."""
    B, N = nodes.shape
    na, H = emb.shape
    f32 = jnp.float32

    # Graphs per grid step: aim for ~target_rows nodes per step (amortizes the
    # per-step pipeline overhead, fills the MXU lane dim), keep >= 2 steps when
    # B allows so the "parallel" axis can use both v7x TensorCores, and cap the
    # (H, R) f32 intermediates at ~4 MiB so every generation's scoped VMEM
    # default (16 MiB on v5e, 32 MiB on v6e/v7x) is comfortably respected.
    rows = min(target_rows, max(N, (4 << 20) // max(4 * H, 1)))
    tb = max(1, rows // max(N, 1))
    if B >= 16:
        tb = min(tb, -(-B // 2))          # leave >= 2 grid steps (megacore)
    tb = min(tb, B)
    if tb < B:
        tb = max(8, (tb // 8) * 8)
    b_pad = -(-B // tb) * tb
    steps = b_pad // tb
    R = tb * N

    # Hoisted column-sum of adj: the fused forward only needs colsum_n(adj_g),
    # so the kernel streams (B, N) instead of the full (B, N, N) adjacency.
    adjcs = jnp.sum(adj.astype(f32), axis=1)                          # (B, N)
    nodes_i = nodes.astype(jnp.int32)
    if b_pad != B:
        nodes_i = jnp.pad(nodes_i, ((0, b_pad - B), (0, 0)))
        adjcs = jnp.pad(adjcs, ((0, b_pad - B), (0, 0)))

    # Lane-dense (steps, 1, tb*N) slabs: node axis on lanes, no 16-wide minors.
    nodes_r = nodes_i.reshape(steps, 1, R)
    adjcs_r = adjcs.reshape(steps, 1, R)

    # Weight folds (done once in f32): embW.T = W @ emb.T and emb @ cw.T.
    hi = jax.lax.Precision.HIGHEST
    embwt = jnp.dot(W.astype(f32), emb.astype(f32).T, precision=hi)   # (H, na)
    cw_row = jnp.reshape(cw, (1, H)).astype(f32)
    embcw = jnp.dot(emb.astype(f32), jnp.reshape(cw, (H, 1)).astype(f32),
                    precision=hi).reshape(1, na)                      # (1, na)
    cb2 = jnp.reshape(cb, (1, 1)).astype(f32)

    out = pl.pallas_call(
        gcn_kernel,
        out_shape=jax.ShapeDtypeStruct((steps, 1, tb), jnp.float32),
        grid=(steps,),
        in_specs=[
            pl.BlockSpec((1, 1, R), lambda s: (s, 0, 0)),             # node ids
            pl.BlockSpec((1, 1, R), lambda s: (s, 0, 0)),             # adj colsums
            pl.BlockSpec((H, na), lambda s: (0, 0)),                  # (emb @ W.T).T
            pl.BlockSpec((1, H), lambda s: (0, 0)),                   # count weight
            pl.BlockSpec(memory_space=pltpu.MemorySpace.SMEM),        # emb @ cw.T
            pl.BlockSpec(memory_space=pltpu.MemorySpace.SMEM),        # count bias
        ],
        out_specs=pl.BlockSpec((1, 1, tb), lambda s: (s, 0, 0)),
        compiler_params=pltpu.CompilerParams(
            dimension_semantics=("parallel",)),
    )(nodes_r, adjcs_r, embwt, cw_row, embcw, cb2)
    return out.reshape(b_pad)[:B]


def gcn_reference(nodes, adj, emb, W, cw, cb):
    h = emb[nodes]                                       # (B, N, H)
    wh = h @ W.T
    awh = jax.nn.sigmoid(wh)
    h2 = h + adj @ awh
    c = h2 @ cw.T + cb                                   # (B, N, 1)
    return jnp.sum(c[..., 0], axis=1)


if __name__ == "__main__":
    # Small shapes consistent with the module (na ids, hidden_dim, B graphs of N nodes).
    B, N, NA, H, PAD_IDX = 2, 16, 4, 32, 0

    key = jax.random.PRNGKey(0)
    k_emb, k_w, k_cw, k_cb, k_nodes, k_adj = jax.random.split(key, 6)

    # Deterministic parameter init (synthetic; mirrors module shapes).
    emb = jax.random.normal(k_emb, (NA, H), jnp.float32)
    emb = emb.at[PAD_IDX].set(0.0)                       # padding_idx=0 -> zero row
    W = jax.random.normal(k_w, (H, H), jnp.float32) * (1.0 / np.sqrt(H))
    cw = jax.random.normal(k_cw, (1, H), jnp.float32) * (1.0 / np.sqrt(H))
    cb = jax.random.normal(k_cb, (1,), jnp.float32) * 0.1

    # Inputs.
    nodes = jax.random.randint(k_nodes, (B, N), 0, NA, dtype=jnp.int32)
    adj = (jax.random.uniform(k_adj, (B, N, N)) < 0.3).astype(jnp.float32)

    fwd = jax.jit(gcn_forward)
    out = jax.block_until_ready(fwd(nodes, adj, emb, W, cw, cb))
    ref = gcn_reference(nodes, adj, emb, W, cw, cb)
    np.testing.assert_allclose(np.asarray(out), np.asarray(ref), rtol=1e-5, atol=1e-4)

    # Multi-step grid path: B not a multiple of tb -> batch padding + >=2 steps.
    B2 = 20
    k_n2, k_a2 = jax.random.split(jax.random.PRNGKey(1), 2)
    nodes2 = jax.random.randint(k_n2, (B2, N), 0, NA, dtype=jnp.int32)
    adj2 = (jax.random.uniform(k_a2, (B2, N, N)) < 0.3).astype(jnp.float32)
    out2 = jax.block_until_ready(jax.jit(gcn_forward)(nodes2, adj2, emb, W, cw, cb))
    ref2 = gcn_reference(nodes2, adj2, emb, W, cw, cb)
    np.testing.assert_allclose(np.asarray(out2), np.asarray(ref2), rtol=1e-5, atol=1e-4)

    print("KERNEL_OK")
</pallas_src>

<mosaic_0001>
module attributes {stable_mosaic.version = 11 : i64} {
  func.func @gcn_kernel(%arg0: i32, %arg1: memref<1x1x32xi32, #tpu.memory_space<vmem>>, %arg2: memref<1x1x32xf32, #tpu.memory_space<vmem>>, %arg3: memref<32x4xf32, #tpu.memory_space<vmem>>, %arg4: memref<1x32xf32, #tpu.memory_space<vmem>>, %arg5: memref<1x4xf32, #tpu.memory_space<smem>>, %arg6: memref<1x1xf32, #tpu.memory_space<smem>>, %arg7: memref<1x1x2xf32, #tpu.memory_space<vmem>>) attributes {dimension_semantics = [#tpu.dimension_semantics<parallel>], iteration_bounds = array<i64: 1>, scalar_prefetch = 0 : i64, scratch_operands = 0 : i64, tpu.core_type = #tpu.core_type<tc>, window_params = [{transform_indices = @transform_0, window_bounds = array<i64: 1, 1, 32>}, {transform_indices = @transform_1, window_bounds = array<i64: 1, 1, 32>}, {pipeline_mode = #tpu.pipeline_mode<synchronous>, transform_indices = @transform_2, window_bounds = array<i64: 32, 4>}, {pipeline_mode = #tpu.pipeline_mode<synchronous>, transform_indices = @transform_3, window_bounds = array<i64: 1, 32>}, {transform_indices = @transform_4, window_bounds = array<i64: 1, 4>}, {transform_indices = @transform_5, window_bounds = array<i64: 1, 1>}, {transform_indices = @transform_6, window_bounds = array<i64: 1, 1, 2>}]} {
    %c0 = arith.constant 0 : index
    %c0_0 = arith.constant 0 : index
    %c0_1 = arith.constant 0 : index
    %0 = vector.load %arg1[%c0, %c0_0, %c0_1] : memref<1x1x32xi32, #tpu.memory_space<vmem>>, vector<1x1x32xi32>
    %1 = vector.shape_cast %0 : vector<1x1x32xi32> to vector<1x32xi32>
    %c0_2 = arith.constant 0 : index
    %c0_3 = arith.constant 0 : index
    %c0_4 = arith.constant 0 : index
    %2 = vector.load %arg2[%c0_2, %c0_3, %c0_4] : memref<1x1x32xf32, #tpu.memory_space<vmem>>, vector<1x1x32xf32>
    %3 = vector.shape_cast %2 : vector<1x1x32xf32> to vector<1x32xf32>
    %4 = tpu.iota {dimensions = array<i32: 0>} : vector<4x32xi32>
    %5 = vector.broadcast %1 : vector<1x32xi32> to vector<4x32xi32>
    %6 = arith.cmpi eq, %4, %5 : vector<4x32xi32>
    %7 = arith.extui %6 : vector<4x32xi1> to vector<4x32xi32>
    %8 = arith.sitofp %7 : vector<4x32xi32> to vector<4x32xf32>
    %c0_5 = arith.constant 0 : index
    %c0_6 = arith.constant 0 : index
    %9 = vector.load %arg3[%c0_5, %c0_6] : memref<32x4xf32, #tpu.memory_space<vmem>>, vector<32x4xf32>
    %cst = arith.constant dense<0.000000e+00> : vector<32x32xf32>
    %10 = tpu.matmul %9, %8, %cst {dimension_numbers = #tpu.dot_dimension_numbers<[1], [0], [0], [1], [0, 0, 1, 1], [], []>} : vector<32x4xf32>, vector<4x32xf32>, vector<32x32xf32> -> vector<32x32xf32>
    %11 = arith.negf %10 : vector<32x32xf32>
    %12 = math.exp %11 : vector<32x32xf32>
    %cst_7 = arith.constant 1.000000e+00 : f32
    %13 = vector.broadcast %cst_7 : f32 to vector<32x32xf32>
    %14 = arith.addf %13, %12 : vector<32x32xf32>
    %15 = arith.divf %13, %14 : vector<32x32xf32>
    %c0_8 = arith.constant 0 : index
    %c0_9 = arith.constant 0 : index
    %16 = vector.load %arg4[%c0_8, %c0_9] : memref<1x32xf32, #tpu.memory_space<vmem>>, vector<1x32xf32>
    %cst_10 = arith.constant dense<0.000000e+00> : vector<1x32xf32>
    %17 = tpu.matmul %16, %15, %cst_10 {dimension_numbers = #tpu.dot_dimension_numbers<[1], [0], [0], [1], [0, 0, 1, 1], [], []>} : vector<1x32xf32>, vector<32x32xf32>, vector<1x32xf32> -> vector<1x32xf32>
    %cst_11 = arith.constant 0.000000e+00 : f32
    %18 = vector.broadcast %cst_11 : f32 to vector<1x32xf32>
    %c0_i32 = arith.constant 0 : i32
    %19 = vector.broadcast %c0_i32 : i32 to vector<1x32xi32>
    %20 = arith.cmpi eq, %1, %19 : vector<1x32xi32>
    %c0_12 = arith.constant 0 : index
    %c0_13 = arith.constant 0 : index
    %21 = memref.load %arg5[%c0_12, %c0_13] : memref<1x4xf32, #tpu.memory_space<smem>>
    %cst_14 = arith.constant 0.000000e+00 : f32
    %22 = vector.broadcast %21 : f32 to vector<1x32xf32>
    %23 = vector.broadcast %cst_14 : f32 to vector<1x32xf32>
    %24 = arith.select %20, %22, %23 : vector<1x32xi1>, vector<1x32xf32>
    %25 = arith.addf %18, %24 : vector<1x32xf32>
    %c1_i32 = arith.constant 1 : i32
    %26 = vector.broadcast %c1_i32 : i32 to vector<1x32xi32>
    %27 = arith.cmpi eq, %1, %26 : vector<1x32xi32>
    %c0_15 = arith.constant 0 : index
    %c1 = arith.constant 1 : index
    %28 = memref.load %arg5[%c0_15, %c1] : memref<1x4xf32, #tpu.memory_space<smem>>
    %cst_16 = arith.constant 0.000000e+00 : f32
    %29 = vector.broadcast %28 : f32 to vector<1x32xf32>
    %30 = vector.broadcast %cst_16 : f32 to vector<1x32xf32>
    %31 = arith.select %27, %29, %30 : vector<1x32xi1>, vector<1x32xf32>
    %32 = arith.addf %25, %31 : vector<1x32xf32>
    %c2_i32 = arith.constant 2 : i32
    %33 = vector.broadcast %c2_i32 : i32 to vector<1x32xi32>
    %34 = arith.cmpi eq, %1, %33 : vector<1x32xi32>
    %c0_17 = arith.constant 0 : index
    %c2 = arith.constant 2 : index
    %35 = memref.load %arg5[%c0_17, %c2] : memref<1x4xf32, #tpu.memory_space<smem>>
    %cst_18 = arith.constant 0.000000e+00 : f32
    %36 = vector.broadcast %35 : f32 to vector<1x32xf32>
    %37 = vector.broadcast %cst_18 : f32 to vector<1x32xf32>
    %38 = arith.select %34, %36, %37 : vector<1x32xi1>, vector<1x32xf32>
    %39 = arith.addf %32, %38 : vector<1x32xf32>
    %c3_i32 = arith.constant 3 : i32
    %40 = vector.broadcast %c3_i32 : i32 to vector<1x32xi32>
    %41 = arith.cmpi eq, %1, %40 : vector<1x32xi32>
    %c0_19 = arith.constant 0 : index
    %c3 = arith.constant 3 : index
    %42 = memref.load %arg5[%c0_19, %c3] : memref<1x4xf32, #tpu.memory_space<smem>>
    %cst_20 = arith.constant 0.000000e+00 : f32
    %43 = vector.broadcast %42 : f32 to vector<1x32xf32>
    %44 = vector.broadcast %cst_20 : f32 to vector<1x32xf32>
    %45 = arith.select %41, %43, %44 : vector<1x32xi1>, vector<1x32xf32>
    %46 = arith.addf %39, %45 : vector<1x32xf32>
    %47 = arith.mulf %3, %17 : vector<1x32xf32>
    %48 = arith.addf %47, %46 : vector<1x32xf32>
    %49 = tpu.iota {dimensions = array<i32: 0>} : vector<32x2xi32>
    %50 = tpu.iota {dimensions = array<i32: 1>} : vector<32x2xi32>
    %c16_i32 = arith.constant 16 : i32
    %51 = vector.broadcast %c16_i32 : i32 to vector<32x2xi32>
    %52 = arith.muli %50, %51 : vector<32x2xi32>
    %53 = arith.subi %49, %52 : vector<32x2xi32>
    %c0_i32_21 = arith.constant 0 : i32
    %54 = vector.broadcast %c0_i32_21 : i32 to vector<32x2xi32>
    %55 = arith.cmpi sge, %53, %54 : vector<32x2xi32>
    %c16_i32_22 = arith.constant 16 : i32
    %56 = vector.broadcast %c16_i32_22 : i32 to vector<32x2xi32>
    %57 = arith.cmpi slt, %53, %56 : vector<32x2xi32>
    %58 = arith.andi %55, %57 : vector<32x2xi1>
    %59 = arith.extui %58 : vector<32x2xi1> to vector<32x2xi32>
    %60 = arith.sitofp %59 : vector<32x2xi32> to vector<32x2xf32>
    %cst_23 = arith.constant dense<0.000000e+00> : vector<1x2xf32>
    %61 = tpu.matmul %48, %60, %cst_23 {dimension_numbers = #tpu.dot_dimension_numbers<[1], [0], [0], [1], [0, 0, 1, 1], [], []>} : vector<1x32xf32>, vector<32x2xf32>, vector<1x2xf32> -> vector<1x2xf32>
    %c0_24 = arith.constant 0 : index
    %c0_25 = arith.constant 0 : index
    %62 = memref.load %arg6[%c0_24, %c0_25] : memref<1x1xf32, #tpu.memory_space<smem>>
    %cst_26 = arith.constant 1.600000e+01 : f32
    %63 = arith.mulf %cst_26, %62 : f32
    %64 = vector.broadcast %63 : f32 to vector<1x2xf32>
    %65 = arith.addf %61, %64 : vector<1x2xf32>
    %c0_27 = arith.constant 0 : index
    %c0_28 = arith.constant 0 : index
    %c0_29 = arith.constant 0 : index
    %66 = vector.load %arg7[%c0_27, %c0_28, %c0_29] : memref<1x1x2xf32, #tpu.memory_space<vmem>>, vector<1x1x2xf32>
    %67 = vector.shape_cast %66 : vector<1x1x2xf32> to vector<1x2xf32>
    %68 = vector.shape_cast %65 : vector<1x2xf32> to vector<1x1x2xf32>
    tpu.vector_store %arg7[%c0_27, %c0_28, %c0_29], %68 {strides = array<i32>} : memref<1x1x2xf32, #tpu.memory_space<vmem>>, vector<1x1x2xf32>,
    return
  }
  func.func @transform_0(%arg0: i32) -> (i32, i32, i32) {
    %c0_i32 = arith.constant 0 : i32
    %c0_i32_0 = arith.constant 0 : i32
    %c0_i32_1 = arith.constant 0 : i32
    return %arg0, %c0_i32, %c0_i32_0 : i32, i32, i32
  }
  func.func @transform_1(%arg0: i32) -> (i32, i32, i32) {
    %c0_i32 = arith.constant 0 : i32
    %c0_i32_0 = arith.constant 0 : i32
    %c0_i32_1 = arith.constant 0 : i32
    return %arg0, %c0_i32, %c0_i32_0 : i32, i32, i32
  }
  func.func @transform_2(%arg0: i32) -> (i32, i32) {
    %c0_i32 = arith.constant 0 : i32
    %c0_i32_0 = arith.constant 0 : i32
    %c0_i32_1 = arith.constant 0 : i32
    return %c0_i32, %c0_i32_0 : i32, i32
  }
  func.func @transform_3(%arg0: i32) -> (i32, i32) {
    %c0_i32 = arith.constant 0 : i32
    %c0_i32_0 = arith.constant 0 : i32
    %c0_i32_1 = arith.constant 0 : i32
    return %c0_i32, %c0_i32_0 : i32, i32
  }
  func.func @transform_4(%arg0: i32) -> (i32, i32) {
    %c0_i32 = arith.constant 0 : i32
    %c0_i32_0 = arith.constant 0 : i32
    %c0_i32_1 = arith.constant 0 : i32
    return %c0_i32, %c0_i32_0 : i32, i32
  }
  func.func @transform_5(%arg0: i32) -> (i32, i32) {
    %c0_i32 = arith.constant 0 : i32
    %c0_i32_0 = arith.constant 0 : i32
    %c0_i32_1 = arith.constant 0 : i32
    return %c0_i32, %c0_i32_0 : i32, i32
  }
  func.func @transform_6(%arg0: i32) -> (i32, i32, i32) {
    %c0_i32 = arith.constant 0 : i32
    %c0_i32_0 = arith.constant 0 : i32
    %c0_i32_1 = arith.constant 0 : i32
    return %arg0, %c0_i32, %c0_i32_0 : i32, i32, i32
  }
}

</mosaic_0001>

<bundles_post_ra>
// kernel: gcn_forward.1
= control target key start
LH: loop header
LB: loop body
LE: loop exit
PB: predicated region body
PF: predicated region fallthrough
CT: control target
= control target key end

     0   :  { %12 = vsyncpa [#allocation5], 0  ;;  %s510_s0 = inlined_call_operand.vmem [shape: s32[1,1,32], index: 0, kind: input, shape index: {}]   ;;  %s511_s1 = inlined_call_operand.vmem [shape: f32[1,1,32], index: 1, kind: input, shape index: {}]   ;;  %s512_s2 = inlined_call_operand.vmem [shape: f32[32,4], index: 2, kind: input, shape index: {}]   ;;  %s513_s3 = inlined_call_operand.vmem [shape: f32[1,32], index: 3, kind: input, shape index: {}]   ;;  %s514_s4 = inlined_call_operand.vmem [shape: f32[1,4], index: 4, kind: input, shape index: {}]   ;;  %s515_s5 = inlined_call_operand.<no memory space> [shape: f32[1,1], index: 5, kind: input, shape index: {}]   ;;  %s516_s6 = inlined_call_operand.hbm [shape: f32[1,1,2], index: 6, kind: output, shape index: {}]  }
   0x1   :  { %13 = vsyncpa [#allocation4], 0  ;;  %s27_s23 = sshll.u32 %s514_s4, 4  ;;  %s379_s24 = smov [#allocation3]   ;;  %s28_s23 = int_to_ptr.vmem [resolvable:$true] %s27_s23 }
   0x2   :  { %30 = dma.vmem_to_smem %s28_s23, 16, %s379_s24, [#allocation5]  }
   0x3   :  { %375 = dma.done.wait [#allocation5], 16  }
   0x4   :  { %376 = vsyncadd [#allocation5], 4294967280 }
   0x5   :  { %37 = sfence }
   0x6   :  { %v40_v0 = vlaneseq  ;;  %v322_v1 = vld [vmem:[%s510_s0] ss:$0 sm:$0xff]  ;;  %vm63_vm0 = vcmask 1043456   ;;  %vm50_vm2 = vcmask 31744   ;;  %v48_v4 = vld [vmem:[%s512_s2 + $0x10] sm:$0xff]  ;;  %v380_v5 = vmov 0.0  }
   0x7   :  { %v46_v3 = vld [vmem:[%s512_s2] sm:$0xff]  ;;  %v47_v7 = vld [vmem:[%s512_s2 + $0x8] sm:$0xff]  ;;  %v49_v8 = vld [vmem:[%s512_s2 + $0x18] sm:$0xff]  ;;  %v381_v37 = vmov 1.0   ;;  %s305_s11 = sld [smem:[#allocation3 + $0x1]]  ;;  %s250_s19 = smul.f32 16.0, %s515_s5 }
   0x8   :  { %v424_v2 = vshrl.u32 %v40_v0, 7  ;;  %v223_v24 = vand.u32 127, %v40_v0  ;;  %s306_s12 = sld [smem:[#allocation3 + $0x2]]  ;;  %s382_s20 = smov [#allocation6]  }
   0x9   :  { %s307_s15 = sld [smem:[#allocation3 + $0x3]]  ;;  %s282_s21 = sshll.u32 %s382_s20, 4  ;;  %s283_s21 = int_to_ptr.vmem [resolvable:$true] %s282_s21 }
   0xa   :  { %vm43_vm1 = vcmp.eq.s32.totalorder %v424_v2, %v322_v1  ;;  %v221_v23 = vadd.s32 24, %v424_v2  ;;  %v449_v26 = vmul.u32 16, %v223_v24  ;;  %v39_v24 = vld [vmem:[%s511_s1] sm:$0x1]  ;;  %s284_s24 = sshll.u32 %s516_s6, 4  ;;  %s285_s24 = int_to_ptr.hbm [resolvable:$true] %s284_s24 }
   0xb   :  { %v294_v6 = vsel %vm43_vm1, 1.0, %v380_v5 }
   0xc   :  { %295 = vmatpush.msk.msra.mxu0 %vm63_vm0, %v294_v6  ;;  %317 = vmatpush.msk.msra.mxu3 %vm63_vm0, %v294_v6  ;;  %v228_v31 = vsub.s32 %v221_v23, %v449_v26 }
   0xd   :  { %296 = vmatmul.msk.f32.vlgmr.msra.gmra.mxu0 %vm50_vm2, %v46_v3  ;;  %298 = vmatmul.msk.f32.vlgmr.msra.gmra.mxu3 %vm50_vm2, %v48_v4 }
   0xe   :  { %vm232_vm3 = vcmp.ge.s32.totalorder %v228_v31, 0  ;;  %vm236_vm4 = vcmp.lt.s32.totalorder %v228_v31, 16 }
   0xf   :  { %vm240_vm5 = vmand %vm232_vm3, %vm236_vm4 }
  0x10   :  { %312 = vmatpush.msk.msra.mxu2 %vm240_vm5, %v381_v37 }
  0x15   :  { %297 = vmatmul.msk.f32.gmra.mxu0 %vm50_vm2, %v47_v7  ;;  %299 = vmatmul.msk.f32.gmra.mxu3 %vm50_vm2, %v49_v8  ;;  %v172_v7 = vld [vmem:[%s513_s3] sm:$0x1]  ;;  %s198_s3 = sld [smem:[#allocation3]] }
  0x8a   :  { %v84_v9 = vpop.f32.mrf.mxu0 }
  0x8b   :  { %v300_v10 = vmul.f32 -1.442695, %v84_v9  ;;  %v220_v9 = vadd.s32 16, %v424_v2 }
  0x8d   :  { %323 = vpow2.f32 %v300_v10  ;;  %v227_v10 = vsub.s32 %v220_v9, %v449_v26 }
  0x90   :  { %v90_v11 = vpop.f32.mrf.mxu3 }
  0x91   :  { %v302_v12 = vmul.f32 -1.442695, %v90_v11  ;;  %v219_v11 = vadd.s32 8, %v424_v2 }
  0x92   :  { %v87_v13 = vpop.f32.mrf.mxu0 }
  0x93   :  { %325 = vpow2.f32 %v302_v12  ;;  %v301_v14 = vmul.f32 -1.442695, %v87_v13  ;;  %v324_v15 = vpop.eup %323  ;;  %v226_v12 = vsub.s32 %v219_v11, %v449_v26  ;;  %v225_v13 = vsub.s32 %v424_v2, %v449_v26 }
  0x94   :  { %v439_v18 = vadd.f32 1.0, %v324_v15  ;;  %v199_v15 = vstv %s198_s3 }
  0x95   :  { %327 = vpow2.f32 %v301_v14  ;;  %v38_v14 = vld [vmem:[%s510_s0] sm:$0x1] }
  0x96   :  { %vm117_vm7 = vweird.f32 %v439_v18  ;;  %v123_v62 = vand.u32 2147483648, %v439_v18  ;;  %v121_v0 = vand.u32 2147483647, %v439_v18 }
  0x98   :  { %v93_v16 = vpop.f32.mrf.mxu3  ;;  %v124_v6 = vor.u32 1.1754944e-38, %v123_v62  ;;  %vm122_vm5 = vcmp.eq.f32.partialorder %v121_v0, 8.507059e+37 }
  0x99   :  { %v326_v17 = vpop.eup %325  ;;  %v303_v19 = vmul.f32 -1.442695, %v93_v16  ;;  %v204_v16 = vstv %s305_s11 }
  0x9a   :  { %v441_v20 = vadd.f32 1.0, %v326_v17 }
  0x9b   :  { %v328_v21 = vpop.eup %327  ;;  %329 = vpow2.f32 %v303_v19 }
  0x9c   :  { %331 = vrcp.f32 %v441_v20  ;;  %v444_v22 = vadd.f32 1.0, %v328_v21  ;;  %vm147_vm9 = vweird.f32 %v441_v20  ;;  %v151_v49 = vand.u32 2147483647, %v441_v20 }
  0x9d   :  { %333 = vrcp.f32 %v439_v18  ;;  %v153_v50 = vand.u32 2147483648, %v441_v20  ;;  %v214_v21 = vstv %s307_s15 }
  0x9e   :  { %335 = vrcp.f32 %v444_v22  ;;  %vm132_vm10 = vweird.f32 %v444_v22  ;;  %v136_v55 = vand.u32 2147483647, %v444_v22  ;;  %v138_v56 = vand.u32 2147483648, %v444_v22 }
  0x9f   :  { %v154_v61 = vor.u32 1.1754944e-38, %v153_v50  ;;  %vm152_vm2 = vcmp.eq.f32.partialorder %v151_v49, 8.507059e+37 }
  0xa0   :  { %v139_v3 = vor.u32 1.1754944e-38, %v138_v56  ;;  %vm137_vm4 = vcmp.eq.f32.partialorder %v136_v55, 8.507059e+37 }
  0xa1   :  { %v330_v25 = vpop.eup %329 }
  0xa2   :  { %v332_v27 = vpop.eup %331  ;;  %v111_v28 = vadd.f32 1.0, %v330_v25 }
  0xa3   :  { %v451_v29 = vpop.eup %333  ;;  %v143_v30 = vmul.f32 %v332_v27, %v441_v20  ;;  %vm148_vm6 = vweird.f32 %v332_v27 }
  0xa4   :  { %v336_v32 = vpop.eup %335  ;;  %337 = vrcp.f32 %v111_v28  ;;  %v113_v34 = vmul.f32 %v451_v29, %v439_v18  ;;  %v168_v44 = vand.u32 2147483648, %v111_v28  ;;  %v166_v47 = vand.u32 2147483647, %v111_v28  ;;  %vm465_vm12 = vmor %vm147_vm9, %vm148_vm6 }
  0xa5   :  { %v128_v33 = vmul.f32 %v336_v32, %v444_v22  ;;  %v144_v35 = vsub.f32 1.0, %v143_v30  ;;  %vm162_vm11 = vweird.f32 %v111_v28  ;;  %vm133_vm13 = vweird.f32 %v336_v32 }
  0xa6   :  { %v114_v39 = vsub.f32 1.0, %v113_v34  ;;  %v169_v54 = vor.u32 1.1754944e-38, %v168_v44  ;;  %vm118_vm15 = vweird.f32 %v451_v29  ;;  %vm167_vm0 = vcmp.eq.f32.partialorder %v166_v47, 8.507059e+37  ;;  %vm134_vm1 = vmor %vm132_vm10, %vm133_vm13 }
  0xa7   :  { %v129_v36 = vsub.f32 1.0, %v128_v33  ;;  %v145_v41 = vmul.f32 %v332_v27, %v144_v35  ;;  %vm119_vm3 = vmor %vm117_vm7, %vm118_vm15  ;;  %vm173_vm6 = vcmask 261120   ;;  %vm231_vm7 = vcmp.ge.s32.totalorder %v227_v10, 0 }
  0xa8   :  { %v115_v45 = vmul.f32 %v451_v29, %v114_v39  ;;  %vm230_vm10 = vcmp.ge.s32.totalorder %v226_v12, 0  ;;  %vm229_vm13 = vcmp.ge.s32.totalorder %v225_v13, 0  ;;  %v209_v18 = vstv %s306_s12 }
  0xa9   :  { %v130_v43 = vmul.f32 %v336_v32, %v129_v36  ;;  %v146_v48 = vadd.f32 %v332_v27, %v145_v41 }
  0xaa   :  { %v338_v38 = vpop.eup %337  ;;  %v116_v59 = vadd.f32 %v451_v29, %v115_v45 }
  0xab   :  { %v158_v40 = vmul.f32 %v338_v38, %v111_v28  ;;  %vm163_vm8 = vweird.f32 %v338_v38  ;;  %v131_v53 = vadd.f32 %v336_v32, %v130_v43  ;;  %v150_v58 = vsel %vm465_vm12, %v332_v27, %v146_v48 }
  0xac   :  { %vm164_vm14 = vmor %vm162_vm11, %vm163_vm8  ;;  %v155_v1 = vsel %vm152_vm2, %v154_v61, %v150_v58  ;;  %v120_v4 = vsel %vm119_vm3, %v451_v29, %v116_v59  ;;  %vm235_vm8 = vcmp.lt.s32.totalorder %v227_v10, 16  ;;  %vm234_vm11 = vcmp.lt.s32.totalorder %v226_v12, 16 }
  0xad   :  { %v159_v42 = vsub.f32 1.0, %v158_v40  ;;  %v135_v63 = vsel %vm134_vm1, %v336_v32, %v131_v53  ;;  %v125_v8 = vsel %vm122_vm5, %v124_v6, %v120_v4  ;;  %vm239_vm9 = vmand %vm231_vm7, %vm235_vm8  ;;  %vm202_vm1 = vcmp.eq.s32.totalorder %v38_v14, 1 }
  0xae   :  { %v140_v5 = vsel %vm137_vm4, %v139_v3, %v135_v63  ;;  %313 = vmatpush.msk.msra.mxu2 %vm239_vm9, %v381_v37  ;;  %vm238_vm12 = vmand %vm230_vm10, %vm234_vm11  ;;  %v205_v17 = vsel %vm202_vm1, %v204_v16, 0.0  ;;  %vm207_vm2 = vcmp.eq.s32.totalorder %v38_v14, 2  ;;  %vm212_vm3 = vcmp.eq.s32.totalorder %v38_v14, 3 }
  0xaf   :  { %v160_v46 = vmul.f32 %v338_v38, %v159_v42  ;;  %v210_v20 = vsel %vm207_vm2, %v209_v18, 0.0  ;;  %v215_v23 = vsel %vm212_vm3, %v214_v21, 0.0  ;;  %v251_v29 = vstv %s250_s19 }
  0xb0   :  { %314 = vmatpush.msk.msra.mxu2 %vm238_vm12, %v381_v37  ;;  %vm275_vm4 = vcmask 8192  }
  0xb1   :  { %v161_v51 = vadd.f32 %v338_v38, %v160_v46 }
  0xb3   :  { %v165_v57 = vsel %vm164_vm14, %v338_v38, %v161_v51  ;;  %vm233_vm14 = vcmp.lt.s32.totalorder %v225_v13, 16 }
  0xb4   :  { %v170_v60 = vsel %vm167_vm0, %v169_v54, %v165_v57  ;;  %vm237_vm15 = vmand %vm229_vm13, %vm233_vm14  ;;  %vm197_vm0 = vcmp.eq.s32.totalorder %v38_v14, 0 }
  0xb5   :  { %189 = vmatpush.msra.mxu1 %v170_v60  ;;  %315 = vmatpush.msk.msra.mxu2 %vm237_vm15, %v381_v37  ;;  %v200_v2 = vsel %vm197_vm0, %v199_v15, 0.0 }
  0xb6   :  { %v206_v19 = vadd.f32 %v205_v17, %v200_v2 }
  0xb7   :  { %190 = vmatpush.msra.mxu1 %v155_v1 }
  0xb8   :  { %v211_v22 = vadd.f32 %v210_v20, %v206_v19 }
  0xb9   :  { %191 = vmatpush.msra.mxu1 %v140_v5 }
  0xba   :  { %v216_v25 = vadd.f32 %v215_v23, %v211_v22 }
  0xbb   :  { %192 = vmatpush.msra.mxu1 %v125_v8 }
  0xbc   :  { %304 = vmatmul.msk.f32.vlgmr.msra.gmra.mxu1 %vm173_vm6, %v172_v7 }
 0x139   :  { %v194_v26 = vpop.f32.mrf.mxu1 }
 0x13a   :  { %v217_v27 = vmul.f32 %v194_v26, %v39_v24 }
 0x13c   :  { %v218_v28 = vadd.f32 %v217_v27, %v216_v25 }
 0x13e   :  { %316 = vmatmul.msk.f32.vlgmr.msra.gmra.mxu2 %vm173_vm6, %v218_v28 }
 0x1c1   :  { %v272_v30 = vpop.f32.mrf.mxu2 }
 0x1c2   :  { %v273_v31 = vadd.f32 %v272_v30, %v251_v29 }
 0x1c4   :  { %276 = vst.msk [vmem:[#allocation6] sm:$0x1] %vm275_vm4, %v273_v31 }
 0x1c5   :  { %287 = dma.vmem_to_hbm [thread:$0]  %s283_s21, 16, %s285_s24, [#allocation4]  }
 0x1c6   :  { %377 = dma.done.wait [#allocation4], 16  }
 0x1c7   :  { %378 = vsyncadd [#allocation4], 4294967280 }
 0x1c8   :  { %292 = vsyncpa [#allocation4], 1 }
 0x1c9   :  { %293 = vsyncpa [#allocation5], 1 }

</bundles_post_ra>
